<compile_context>
chip_gen: v6e
topology: v6e:2x2x1
jax: 0.10.0
libtpu: 0.0.40
codegen_flags: <defaults>
</compile_context>

<pallas_src>
import functools

import jax
import jax.numpy as jnp
from jax.experimental import pallas as pl
from jax.experimental.pallas import tpu as pltpu


# ---------------------------------------------------------------------------
# helpers
# ---------------------------------------------------------------------------
def _round_up(n, m):
    return ((n + m - 1) // m) * m


def _pad2d(a, rows, cols):
    r, c = a.shape
    return jnp.pad(a, ((0, rows - r), (0, cols - c)))


# ---------------------------------------------------------------------------
# Fused 2-layer MLP kernels (one pallas_call per network forward)
#   hidden activation lives only in registers/VMEM inside the kernel.
# ---------------------------------------------------------------------------
def _generator_kernel(z_ref, w1_ref, b1_ref, w2_ref, b2_ref, o_ref):
    z = z_ref[...].astype(jnp.bfloat16)
    h = jnp.dot(z, w1_ref[...], preferred_element_type=jnp.float32) + b1_ref[...]
    h = jnp.maximum(h, 0.0)                                   # ReLU (f32 VPU)
    y = jnp.dot(h.astype(jnp.bfloat16), w2_ref[...],
                preferred_element_type=jnp.float32) + b2_ref[...]
    o_ref[...] = jnp.tanh(y)                                  # EUP


def _discriminator_kernel(x_ref, w1_ref, b1_ref, w2_ref, b2_ref, o_ref):
    x = x_ref[...].astype(jnp.bfloat16)
    h = jnp.dot(x, w1_ref[...], preferred_element_type=jnp.float32) + b1_ref[...]
    h = jnp.where(h > 0.0, h, 0.2 * h)                        # LeakyReLU(0.2)
    y = jnp.dot(h.astype(jnp.bfloat16), w2_ref[...],
                preferred_element_type=jnp.float32) + b2_ref[...]
    o_ref[...] = jax.nn.sigmoid(y)                            # EUP sigmoid


def _fused_mlp(kernel, x, w1, b1, w2, b2, *, batch_block=128):
    """x:(B,K) f32, w1:(K,Hp) bf16, b1:(1,Hp) f32, w2:(Hp,N) bf16, b2:(1,N) f32
       -> (B, N) f32.  Batch is tiled (parallel axis); weights are broadcast."""
    B, K = x.shape
    Hp = w1.shape[1]
    N = w2.shape[1]

    # pad batch to the sublane granule / batch block
    bb = min(batch_block, _round_up(B, 8))
    b_pad = _round_up(B, bb)
    if b_pad != B:
        x = jnp.pad(x, ((0, b_pad - B), (0, 0)))

    out = pl.pallas_call(
        kernel,
        out_shape=jax.ShapeDtypeStruct((b_pad, N), jnp.float32),
        grid=(b_pad // bb,),
        in_specs=[
            pl.BlockSpec((bb, K), lambda i: (i, 0)),
            pl.BlockSpec((K, Hp), lambda i: (0, 0)),
            pl.BlockSpec((1, Hp), lambda i: (0, 0)),
            pl.BlockSpec((Hp, N), lambda i: (0, 0)),
            pl.BlockSpec((1, N), lambda i: (0, 0)),
        ],
        out_specs=pl.BlockSpec((bb, N), lambda i: (i, 0)),
        compiler_params=pltpu.CompilerParams(
            dimension_semantics=("parallel",)),
    )(x, w1, b1, w2, b2)
    return out[:B]


# ---------------------------------------------------------------------------
# Deterministic parameter construction (synthetic; no checkpoint loading)
# ---------------------------------------------------------------------------
def _init_linear(key, k_in, k_out):
    kw, kb = jax.random.split(key)
    scale = 1.0 / jnp.sqrt(jnp.float32(k_in))
    w = jax.random.uniform(kw, (k_in, k_out), jnp.float32, -scale, scale)
    b = jax.random.uniform(kb, (1, k_out), jnp.float32, -scale, scale)
    return w, b


class DevModelPallas:
    """Pallas/JAX port of DevModel with a concrete small MLP GAN pair.

    Weights are zero-padded to 128-lane granules so every kernel output is
    lane-dense; padding is mathematically inert (zero rows/cols) and the
    true outputs are sliced out in the wrappers.
    """

    def __init__(self, z_dim=32, hidden=64, channels=4, spatial=16, seed=0):
        self.z_dim = z_dim
        self.hidden = hidden
        self.channels = channels
        self.spatial = spatial
        self.img_flat = channels * spatial * spatial        # 1024 (128-aligned)

        hp = _round_up(hidden, 128)                          # padded hidden width
        np_head = 128                                        # padded D head width
        self._hp = hp
        self._np_head = np_head

        key = jax.random.PRNGKey(seed)
        kg1, kg2, kd1, kd2 = jax.random.split(key, 4)

        g_w1, g_b1 = _init_linear(kg1, z_dim, hidden)
        g_w2, g_b2 = _init_linear(kg2, hidden, self.img_flat)
        d_w1, d_b1 = _init_linear(kd1, self.img_flat, hidden)
        d_w2, d_b2 = _init_linear(kd2, hidden, 1)

        # generator params (weights bf16 for MXU, biases f32)
        self.g_w1 = _pad2d(g_w1, z_dim, hp).astype(jnp.bfloat16)
        self.g_b1 = _pad2d(g_b1, 1, hp)
        self.g_w2 = _pad2d(g_w2, hp, self.img_flat).astype(jnp.bfloat16)
        self.g_b2 = g_b2
        # discriminator params
        self.d_w1 = _pad2d(d_w1, self.img_flat, hp).astype(jnp.bfloat16)
        self.d_b1 = _pad2d(d_b1, 1, hp)
        self.d_w2 = _pad2d(d_w2, hp, np_head).astype(jnp.bfloat16)
        self.d_b2 = _pad2d(d_b2, 1, np_head)

    # generator forward: z(B,Z) -> fake images (B, C, H, W)
    def get_fake_images(self, z):
        B = z.shape[0]
        flat = _fused_mlp(_generator_kernel, z.astype(jnp.float32),
                          self.g_w1, self.g_b1, self.g_w2, self.g_b2)
        return flat.reshape(B, self.channels, self.spatial, self.spatial)

    # discriminator forward: images (B, C, H, W) -> probability (B, 1)
    def get_predict(self, images):
        B = images.shape[0]
        flat = images.reshape(B, -1).astype(jnp.float32)
        p_pad = _fused_mlp(_discriminator_kernel, flat,
                           self.d_w1, self.d_b1, self.d_w2, self.d_b2)
        return p_pad[:, :1]                 # real head is lane 0 of the slab

    # reproduce DevModel.forward semantics exactly
    def __call__(self, *args, **kwargs):
        raise RuntimeError(
            "Do not use __call__, the situation of GAN's Module is complex! "
            "Please use methods get_predict and get_fake_images."
        )


if __name__ == "__main__":
    B, Z, C, S = 2, 32, 4, 16
    model = DevModelPallas(z_dim=Z, hidden=64, channels=C, spatial=S, seed=0)

    key = jax.random.PRNGKey(0)
    z = jax.random.normal(key, (B, Z), dtype=jnp.float32)

    fake = model.get_fake_images(z)          # (2, 4, 16, 16), NCHW
    pred = model.get_predict(fake)           # (2, 1)

    jax.block_until_ready(fake)
    jax.block_until_ready(pred)

    assert fake.shape == (B, C, S, S)
    assert pred.shape == (B, 1)
    assert bool(jnp.all(jnp.isfinite(fake))) and bool(jnp.all(jnp.isfinite(pred)))
    assert bool(jnp.all(jnp.abs(fake) <= 1.0))           # tanh range
    assert bool(jnp.all((pred >= 0.0) & (pred <= 1.0)))  # sigmoid range

    # verify forward() raises, matching the PyTorch module
    try:
        model(z)
        raise AssertionError("forward should have raised RuntimeError")
    except RuntimeError:
        pass

    print("KERNEL_OK")
</pallas_src>

<mosaic_0001>
module attributes {stable_mosaic.version = 11 : i64} {
  func.func @_generator_kernel(%arg0: i32, %arg1: memref<8x32xf32, #tpu.memory_space<vmem>>, %arg2: memref<32x128xbf16, #tpu.memory_space<vmem>>, %arg3: memref<1x128xf32, #tpu.memory_space<vmem>>, %arg4: memref<128x1024xbf16, #tpu.memory_space<vmem>>, %arg5: memref<1x1024xf32, #tpu.memory_space<vmem>>, %arg6: memref<8x1024xf32, #tpu.memory_space<vmem>>) attributes {dimension_semantics = [#tpu.dimension_semantics<parallel>], iteration_bounds = array<i64: 1>, scalar_prefetch = 0 : i64, scratch_operands = 0 : i64, tpu.core_type = #tpu.core_type<tc>, window_params = [{transform_indices = @transform_0, window_bounds = array<i64: 8, 32>}, {pipeline_mode = #tpu.pipeline_mode<synchronous>, transform_indices = @transform_1, window_bounds = array<i64: 32, 128>}, {pipeline_mode = #tpu.pipeline_mode<synchronous>, transform_indices = @transform_2, window_bounds = array<i64: 1, 128>}, {pipeline_mode = #tpu.pipeline_mode<synchronous>, transform_indices = @transform_3, window_bounds = array<i64: 128, 1024>}, {pipeline_mode = #tpu.pipeline_mode<synchronous>, transform_indices = @transform_4, window_bounds = array<i64: 1, 1024>}, {transform_indices = @transform_5, window_bounds = array<i64: 8, 1024>}]} {
    %c0 = arith.constant 0 : index
    %c0_0 = arith.constant 0 : index
    %0 = vector.load %arg1[%c0, %c0_0] : memref<8x32xf32, #tpu.memory_space<vmem>>, vector<8x32xf32>
    %1 = arith.truncf %0 : vector<8x32xf32> to vector<8x32xbf16>
    %c0_1 = arith.constant 0 : index
    %c0_2 = arith.constant 0 : index
    %2 = vector.load %arg2[%c0_1, %c0_2] : memref<32x128xbf16, #tpu.memory_space<vmem>>, vector<32x128xbf16>
    %cst = arith.constant dense<0.000000e+00> : vector<8x128xf32>
    %3 = tpu.matmul %1, %2, %cst {dimension_numbers = #tpu.dot_dimension_numbers<[1], [0], [0], [1], [0, 0, 1, 1], [], []>} : vector<8x32xbf16>, vector<32x128xbf16>, vector<8x128xf32> -> vector<8x128xf32>
    %c0_3 = arith.constant 0 : index
    %c0_4 = arith.constant 0 : index
    %4 = vector.load %arg3[%c0_3, %c0_4] : memref<1x128xf32, #tpu.memory_space<vmem>>, vector<1x128xf32>
    %5 = vector.broadcast %4 : vector<1x128xf32> to vector<8x128xf32>
    %6 = arith.addf %3, %5 : vector<8x128xf32>
    %cst_5 = arith.constant 0.000000e+00 : f32
    %7 = vector.broadcast %cst_5 : f32 to vector<8x128xf32>
    %8 = arith.maximumf %6, %7 : vector<8x128xf32>
    %9 = arith.truncf %8 : vector<8x128xf32> to vector<8x128xbf16>
    %c0_6 = arith.constant 0 : index
    %c0_7 = arith.constant 0 : index
    %10 = vector.load %arg4[%c0_6, %c0_7] : memref<128x1024xbf16, #tpu.memory_space<vmem>>, vector<128x1024xbf16>
    %cst_8 = arith.constant dense<0.000000e+00> : vector<8x1024xf32>
    %11 = tpu.matmul %9, %10, %cst_8 {dimension_numbers = #tpu.dot_dimension_numbers<[1], [0], [0], [1], [0, 0, 1, 1], [], []>} : vector<8x128xbf16>, vector<128x1024xbf16>, vector<8x1024xf32> -> vector<8x1024xf32>
    %c0_9 = arith.constant 0 : index
    %c0_10 = arith.constant 0 : index
    %12 = vector.load %arg5[%c0_9, %c0_10] : memref<1x1024xf32, #tpu.memory_space<vmem>>, vector<1x1024xf32>
    %13 = vector.broadcast %12 : vector<1x1024xf32> to vector<8x1024xf32>
    %14 = arith.addf %11, %13 : vector<8x1024xf32>
    %15 = math.tanh %14 : vector<8x1024xf32>
    %c0_11 = arith.constant 0 : index
    %c0_12 = arith.constant 0 : index
    %16 = vector.load %arg6[%c0_11, %c0_12] : memref<8x1024xf32, #tpu.memory_space<vmem>>, vector<8x1024xf32>
    tpu.vector_store %arg6[%c0_11, %c0_12], %15 {strides = array<i32>} : memref<8x1024xf32, #tpu.memory_space<vmem>>, vector<8x1024xf32>,
    return
  }
  func.func @transform_0(%arg0: i32) -> (i32, i32) {
    %c0_i32 = arith.constant 0 : i32
    %c0_i32_0 = arith.constant 0 : i32
    return %arg0, %c0_i32 : i32, i32
  }
  func.func @transform_1(%arg0: i32) -> (i32, i32) {
    %c0_i32 = arith.constant 0 : i32
    %c0_i32_0 = arith.constant 0 : i32
    %c0_i32_1 = arith.constant 0 : i32
    return %c0_i32, %c0_i32_0 : i32, i32
  }
  func.func @transform_2(%arg0: i32) -> (i32, i32) {
    %c0_i32 = arith.constant 0 : i32
    %c0_i32_0 = arith.constant 0 : i32
    %c0_i32_1 = arith.constant 0 : i32
    return %c0_i32, %c0_i32_0 : i32, i32
  }
  func.func @transform_3(%arg0: i32) -> (i32, i32) {
    %c0_i32 = arith.constant 0 : i32
    %c0_i32_0 = arith.constant 0 : i32
    %c0_i32_1 = arith.constant 0 : i32
    return %c0_i32, %c0_i32_0 : i32, i32
  }
  func.func @transform_4(%arg0: i32) -> (i32, i32) {
    %c0_i32 = arith.constant 0 : i32
    %c0_i32_0 = arith.constant 0 : i32
    %c0_i32_1 = arith.constant 0 : i32
    return %c0_i32, %c0_i32_0 : i32, i32
  }
  func.func @transform_5(%arg0: i32) -> (i32, i32) {
    %c0_i32 = arith.constant 0 : i32
    %c0_i32_0 = arith.constant 0 : i32
    return %arg0, %c0_i32 : i32, i32
  }
}

</mosaic_0001>

<bundles_post_ra>
// kernel: tpu_custom_call.1
= control target key start
LH: loop header
LB: loop body
LE: loop exit
PB: predicated region body
PF: predicated region fallthrough
CT: control target
= control target key end

     0   :  { %10 = vsyncpa [#allocation3], 0  ;;  %s1050_s0 = inlined_call_operand.hbm [shape: f32[8,32], index: 0, kind: input, shape index: {}]   ;;  %s1051_s1 = inlined_call_operand.hbm [shape: bf16[32,128], index: 1, kind: input, shape index: {}]   ;;  %s1052_s2 = inlined_call_operand.vmem [shape: f32[1,128], index: 2, kind: input, shape index: {}]   ;;  %s1053_s3 = inlined_call_operand.hbm [shape: bf16[128,1024], index: 3, kind: input, shape index: {}]   ;;  %s1054_s4 = inlined_call_operand.hbm [shape: f32[1,1024], index: 4, kind: input, shape index: {}]   ;;  %s1055_s5 = inlined_call_operand.hbm [shape: f32[8,1024], index: 5, kind: output, shape index: {}]  }
   0x1   :  { %11 = vsyncpa [#allocation6], 0 }
   0x2   :  { %12 = vsyncpa [#allocation9], 0 }
   0x3   :  { %13 = vsyncpa [#allocation4], 0  ;;  %s984_s18 = smov [#allocation5]  }
   0x4   :  { %s29_s19 = sshll.u32 %s984_s18, 4  ;;  %s30_s19 = int_to_ptr.vmem [resolvable:$true] %s29_s19 }
   0x5   :  { %s884_s20 = scalar_lea.vmem %s30_s19, 256  ;;  %p889_p1 = scmp.lt.s32.totalorder %s30_s19, %s30_s19 }
   0x6   :  { %p885_p0 = scmp.ne.s32.totalorder %s30_s19, %s884_s20  ;;  %p890_p2 = scmp.lt.s32.totalorder %s884_s20, %s884_s20 }
   0x8   :  { %p891_p3 = por %p890_p2, %p889_p1 }
   0xa   :  { %p892_p4 = pnand %p891_p3, %p885_p0 }
   0xc   :  { %895 = shalt.err (!%p892_p4)
}
   0xd   :  { %s985_s21 = smov 64   ;;  %s986_s22 = smov 4  }
   0xe   :  { %35 = dma.hbm_to_vmem [thread:$0]  %s1051_s1, 256, %s30_s19, [#allocation6], %s985_s21, %s985_s21, %s986_s22  }
   0xf   :  { %s987_s25 = smov [#allocation2]   ;;  %s988_s27 = smov [#allocation7]  }
  0x10   :  { %s20_s26 = sshll.u32 %s987_s25, 4  ;;  %s43_s28 = sshll.u32 %s988_s27, 4  ;;  %s21_s26 = int_to_ptr.vmem [resolvable:$true] %s20_s26  ;;  %s44_s28 = int_to_ptr.vmem [resolvable:$true] %s43_s28 }
  0x11   :  { %s904_s29 = scalar_lea.vmem %s21_s26, 128  ;;  %p909_p6 = scmp.lt.s32.totalorder %s21_s26, %s21_s26 }
  0x12   :  { %p905_p5 = scmp.ne.s32.totalorder %s21_s26, %s904_s29  ;;  %p910_p7 = scmp.lt.s32.totalorder %s904_s29, %s904_s29 }
  0x14   :  { %p911_p8 = por %p910_p7, %p909_p6 }
  0x16   :  { %p912_p9 = pnand %p911_p8, %p905_p5 }
  0x18   :  { %915 = shalt.err (!%p912_p9)
}
  0x19   :  { %23 = dma.hbm_to_vmem [thread:$0]  %s1050_s0, 128, %s21_s26, [#allocation3]  }
  0x1a   :  { %s924_s7 = scalar_lea.vmem %s44_s28, 8192  ;;  %p929_p11 = scmp.lt.s32.totalorder %s44_s28, %s44_s28 }
  0x1b   :  { %p925_p10 = scmp.ne.s32.totalorder %s44_s28, %s924_s7  ;;  %p930_p12 = scmp.lt.s32.totalorder %s924_s7, %s924_s7 }
  0x1d   :  { %p931_p13 = por %p930_p12, %p929_p11 }
  0x1f   :  { %p932_p0 = pnand %p931_p13, %p925_p10 }
  0x21   :  { %935 = shalt.err (!%p932_p0)
}
  0x22   :  { %s989_s1 = smov 512   ;;  %s990_s8 = smov 32  }
  0x23   :  { %49 = dma.hbm_to_vmem [thread:$0]  %s1053_s3, 8192, %s44_s28, [#allocation6], %s989_s1, %s989_s1, %s990_s8  }
  0x24   :  { %s991_s11 = smov [#allocation8]  }
  0x25   :  { %s56_s12 = sshll.u32 %s991_s11, 4  ;;  %s57_s12 = int_to_ptr.vmem [resolvable:$true] %s56_s12 }
  0x26   :  { %s944_s13 = scalar_lea.vmem %s57_s12, 128  ;;  %p949_p2 = scmp.lt.s32.totalorder %s57_s12, %s57_s12 }
  0x27   :  { %p945_p1 = scmp.ne.s32.totalorder %s57_s12, %s944_s13  ;;  %p950_p3 = scmp.lt.s32.totalorder %s944_s13, %s944_s13 }
  0x29   :  { %p951_p4 = por %p950_p3, %p949_p2 }
  0x2b   :  { %p952_p5 = pnand %p951_p4, %p945_p1 }
  0x2d   :  { %955 = shalt.err (!%p952_p5)
}
  0x2e   :  { %59 = dma.hbm_to_vmem [thread:$0]  %s1054_s4, 128, %s57_s12, [#allocation9]  }
  0x2f   :  { %976 = dma.done.wait [#allocation3], 128  }
  0x30   :  { %977 = vsyncadd [#allocation3], 4294967168 }
  0x31   :  { %978 = dma.done.wait [#allocation6], 8448  }
  0x32   :  { %979 = vsyncadd [#allocation6], 4294958848 }
  0x33   :  { %980 = dma.done.wait [#allocation9], 128  }
  0x34   :  { %981 = vsyncadd [#allocation9], 4294967168  ;;  %v992_v0 = vmov 0.0   ;;  %vm993_vm0 = vmmov 0   ;;  %v858_v1 = vld [vmem:[#allocation5 + $0x8] sm:$0xff]   ;;  %v859_v2 = vld [vmem:[#allocation5] sm:$0xff]  }
  0x35   :  { %838 = vmatprep.subr.bf16.mxu0 %v992_v0  ;;  %842 = vmatprep.mubr.msk.bf16.mxu0 %vm993_vm0, %v992_v0  ;;  %v73_v3 = vld [vmem:[#allocation2] sm:$0xff]  ;;  %v200_v4 = vld [vmem:[#allocation7 + $0x1c0] sm:$0xff]  ;;  %vm98_vm1 = vcmask 261120  }
  0x36   :  { %839 = vmatpush3.bf16.msra.mxu0 %v858_v1  ;;  %v204_v5 = vld [vmem:[#allocation7 + $0x1e0] sm:$0xff]  ;;  %v201_v7 = vld [vmem:[#allocation7 + $0x1c8] sm:$0xff]  ;;  %v74_v15 = vpack.c.bf16 %v73_v3, %v73_v3 }
  0x37   :  { %840 = vmatprep.subr.bf16.mxu0 %v992_v0  ;;  %v828_v6 = vcombine.high %v200_v4, %v204_v5  ;;  %v205_v8 = vld [vmem:[#allocation7 + $0x1e8] sm:$0xff]  ;;  %v827_v9 = vcombine.low %v200_v4, %v204_v5  ;;  %v192_v10 = vld [vmem:[#allocation7 + $0x180] sm:$0xff]  ;;  %v202_v5 = vld [vmem:[#allocation7 + $0x1d0] sm:$0xff] }
  0x38   :  { %v830_v11 = vcombine.high %v201_v7, %v205_v8  ;;  %v196_v12 = vld [vmem:[#allocation7 + $0x1a0] sm:$0xff]  ;;  %v193_v13 = vld [vmem:[#allocation7 + $0x188] sm:$0xff]  ;;  %v829_v19 = vcombine.low %v201_v7, %v205_v8  ;;  %v203_v7 = vld [vmem:[#allocation7 + $0x1d8] sm:$0xff] }
  0x39   :  { %v197_v14 = vld [vmem:[#allocation7 + $0x1a8] sm:$0xff]  ;;  %570 = vmatprep.subr.bf16.mxu1 %v828_v6  ;;  %v820_v16 = vcombine.high %v192_v10, %v196_v12  ;;  %v184_v17 = vld [vmem:[#allocation7 + $0x140] sm:$0xff]  ;;  %v819_v20 = vcombine.low %v192_v10, %v196_v12  ;;  %v206_v6 = vld [vmem:[#allocation7 + $0x1f0] sm:$0xff] }
  0x3a   :  { %v188_v18 = vld [vmem:[#allocation7 + $0x160] sm:$0xff]  ;;  %841 = vmatpush3.bf16.msra.mxu0 %v859_v2  ;;  %571 = vmatpush1.bf16.msra.mxu1 %v827_v9  ;;  %v822_v21 = vcombine.high %v193_v13, %v197_v14  ;;  %v185_v23 = vld [vmem:[#allocation7 + $0x148] sm:$0xff]  ;;  %v821_v27 = vcombine.low %v193_v13, %v197_v14  ;;  %v832_v8 = vcombine.high %v202_v5, %v206_v6  ;;  %v207_v9 = vld [vmem:[#allocation7 + $0x1f8] sm:$0xff]  ;;  %v994_v13 = vmov 0  }
  0x3b   :  { %611 = vmatprep.subr.bf16.mxu0 %v830_v11  ;;  %572 = vmatprep.subr.bf16.mxu1 %v820_v16  ;;  %v812_v22 = vcombine.high %v184_v17, %v188_v18  ;;  %v189_v24 = vld [vmem:[#allocation7 + $0x168] sm:$0xff]  ;;  %v176_v25 = vld [vmem:[#allocation7 + $0x100] sm:$0xff]  ;;  %v811_v28 = vcombine.low %v184_v17, %v188_v18  ;;  %v831_v10 = vcombine.low %v202_v5, %v206_v6  ;;  %v194_v17 = vld [vmem:[#allocation7 + $0x190] sm:$0xff] }
  0x3c   :  { %v180_v26 = vld [vmem:[#allocation7 + $0x120] sm:$0xff]  ;;  %v814_v29 = vcombine.high %v185_v23, %v189_v24  ;;  %v177_v31 = vld [vmem:[#allocation7 + $0x108] sm:$0xff]  ;;  %v813_v35 = vcombine.low %v185_v23, %v189_v24  ;;  %v833_v11 = vcombine.low %v203_v7, %v207_v9  ;;  %v834_v12 = vcombine.high %v203_v7, %v207_v9  ;;  %602 = vmatprep.mubr.bf16.mxu1 %v994_v13  ;;  %v150_v5 = vld [vmem:[#allocation7 + $0x30] sm:$0xff] }
  0x3d   :  { %843 = vmatmul.mubr.msk.bf16.vlgmr.msra.gmra.mxu0 %vm98_vm1, %v74_v15  ;;  %v804_v30 = vcombine.high %v176_v25, %v180_v26  ;;  %v181_v32 = vld [vmem:[#allocation7 + $0x128] sm:$0xff]  ;;  %v168_v33 = vld [vmem:[#allocation7 + $0xc0] sm:$0xff]  ;;  %v803_v36 = vcombine.low %v176_v25, %v180_v26  ;;  %v147_v6 = vld [vmem:[#allocation7 + $0x18] sm:$0xff] }
  0x3e   :  { %612 = vmatpush1.bf16.msra.mxu0 %v829_v19  ;;  %573 = vmatpush1.bf16.msra.mxu1 %v819_v20  ;;  %v172_v34 = vld [vmem:[#allocation7 + $0xe0] sm:$0xff]  ;;  %v806_v37 = vcombine.high %v177_v31, %v181_v32  ;;  %v169_v39 = vld [vmem:[#allocation7 + $0xc8] sm:$0xff]  ;;  %v805_v43 = vcombine.low %v177_v31, %v181_v32  ;;  %v198_v19 = vld [vmem:[#allocation7 + $0x1b0] sm:$0xff] }
  0x3f   :  { %613 = vmatprep.subr.bf16.mxu0 %v822_v21  ;;  %574 = vmatprep.subr.bf16.mxu1 %v812_v22  ;;  %v796_v38 = vcombine.high %v168_v33, %v172_v34  ;;  %v173_v40 = vld [vmem:[#allocation7 + $0xe8] sm:$0xff]  ;;  %v160_v41 = vld [vmem:[#allocation7 + $0x80] sm:$0xff]  ;;  %v795_v44 = vcombine.low %v168_v33, %v172_v34  ;;  %v195_v20 = vld [vmem:[#allocation7 + $0x198] sm:$0xff]  ;;  %v824_v25 = vcombine.high %v194_v17, %v198_v19 }
  0x40   :  { %v164_v42 = vld [vmem:[#allocation7 + $0xa0] sm:$0xff]  ;;  %v798_v45 = vcombine.high %v169_v39, %v173_v40  ;;  %v161_v47 = vld [vmem:[#allocation7 + $0x88] sm:$0xff]  ;;  %v797_v51 = vcombine.low %v169_v39, %v173_v40  ;;  %643 = vmatprep.mubr.bf16.mxu0 %v994_v13  ;;  %v199_v21 = vld [vmem:[#allocation7 + $0x1b8] sm:$0xff]  ;;  %v823_v32 = vcombine.low %v194_v17, %v198_v19 }
  0x41   :  { %v788_v46 = vcombine.high %v160_v41, %v164_v42  ;;  %v165_v48 = vld [vmem:[#allocation7 + $0xa8] sm:$0xff]  ;;  %v152_v49 = vld [vmem:[#allocation7 + $0x40] sm:$0xff]  ;;  %v787_v52 = vcombine.low %v160_v41, %v164_v42  ;;  %v826_v26 = vcombine.high %v195_v20, %v199_v21  ;;  %v191_v31 = vld [vmem:[#allocation7 + $0x178] sm:$0xff]  ;;  %v825_v33 = vcombine.low %v195_v20, %v199_v21 }
  0x42   :  { %614 = vmatpush1.bf16.msra.mxu0 %v821_v27  ;;  %575 = vmatpush1.bf16.msra.mxu1 %v811_v28  ;;  %v156_v50 = vld [vmem:[#allocation7 + $0x60] sm:$0xff]  ;;  %v790_v53 = vcombine.high %v161_v47, %v165_v48  ;;  %v153_v55 = vld [vmem:[#allocation7 + $0x48] sm:$0xff]  ;;  %v789_v57 = vcombine.low %v161_v47, %v165_v48  ;;  %v186_v27 = vld [vmem:[#allocation7 + $0x150] sm:$0xff] }
  0x43   :  { %615 = vmatprep.subr.bf16.mxu0 %v814_v29  ;;  %576 = vmatprep.subr.bf16.mxu1 %v804_v30  ;;  %v780_v54 = vcombine.high %v152_v49, %v156_v50  ;;  %v157_v56 = vld [vmem:[#allocation7 + $0x68] sm:$0xff]  ;;  %v779_v58 = vcombine.low %v152_v49, %v156_v50  ;;  %v144_v61 = vld [vmem:[#allocation7] sm:$0xff]  ;;  %v190_v29 = vld [vmem:[#allocation7 + $0x170] sm:$0xff] }
  0x44   :  { %v782_v59 = vcombine.high %v153_v55, %v157_v56  ;;  %v781_v60 = vcombine.low %v153_v55, %v157_v56  ;;  %v148_v62 = vld [vmem:[#allocation7 + $0x20] sm:$0xff]  ;;  %v145_v63 = vld [vmem:[#allocation7 + $0x8] sm:$0xff]  ;;  %v187_v30 = vld [vmem:[#allocation7 + $0x158] sm:$0xff]  ;;  %v816_v34 = vcombine.high %v186_v27, %v190_v29  ;;  %v815_v40 = vcombine.low %v186_v27, %v190_v29 }
  0x45   :  { %v772_v0 = vcombine.high %v144_v61, %v148_v62  ;;  %v149_v1 = vld [vmem:[#allocation7 + $0x28] sm:$0xff]  ;;  %v771_v4 = vcombine.low %v144_v61, %v148_v62  ;;  %v183_v39 = vld [vmem:[#allocation7 + $0x138] sm:$0xff]  ;;  %v817_v41 = vcombine.low %v187_v30, %v191_v31  ;;  %v158_v61 = vld [vmem:[#allocation7 + $0x70] sm:$0xff] }
  0x46   :  { %616 = vmatpush1.bf16.msra.mxu0 %v813_v35  ;;  %577 = vmatpush1.bf16.msra.mxu1 %v803_v36  ;;  %v773_v2 = vcombine.low %v145_v63, %v149_v1  ;;  %v774_v3 = vcombine.high %v145_v63, %v149_v1  ;;  %v767_v14 = vld [vmem:[%s1052_s2] ss:$0 sm:$0xff]  ;;  %v818_v35 = vcombine.high %v187_v30, %v191_v31  ;;  %v178_v36 = vld [vmem:[#allocation7 + $0x110] sm:$0xff]  ;;  %v175_v47 = vld [vmem:[#allocation7 + $0xf8] sm:$0xff]  ;;  %s995_s2 = smov [#allocation10]  }
  0x47   :  { %617 = vmatprep.subr.bf16.mxu0 %v806_v37  ;;  %578 = vmatprep.subr.bf16.mxu1 %v796_v38  ;;  %v182_v37 = vld [vmem:[#allocation7 + $0x130] sm:$0xff]  ;;  %v179_v38 = vld [vmem:[#allocation7 + $0x118] sm:$0xff]  ;;  %s756_s15 = sshll.u32 %s995_s2, 4  ;;  %s757_s15 = int_to_ptr.vmem [resolvable:$true] %s756_s15 }
  0x48   :  { %v808_v42 = vcombine.high %v178_v36, %v182_v37  ;;  %v807_v48 = vcombine.low %v178_v36, %v182_v37  ;;  %v809_v49 = vcombine.low %v179_v38, %v183_v39  ;;  %v167_v55 = vld [vmem:[#allocation7 + $0xb8] sm:$0xff]  ;;  %s956_s16 = scalar_lea.vmem %s757_s15, 1024  ;;  %p961_p7 = scmp.lt.s32.totalorder %s757_s15, %s757_s15 }
  0x49   :  { %v155_v62 = vld [vmem:[#allocation7 + $0x58] sm:$0xff]  ;;  %p957_p6 = scmp.ne.s32.totalorder %s757_s15, %s956_s16  ;;  %p962_p8 = scmp.lt.s32.totalorder %s956_s16, %s956_s16 }
  0x4a   :  { %618 = vmatpush1.bf16.msra.mxu0 %v805_v43  ;;  %579 = vmatpush1.bf16.msra.mxu1 %v795_v44  ;;  %v810_v43 = vcombine.high %v179_v38, %v183_v39  ;;  %v170_v44 = vld [vmem:[#allocation7 + $0xd0] sm:$0xff]  ;;  %v159_v63 = vld [vmem:[#allocation7 + $0x78] sm:$0xff] }
  0x4b   :  { %619 = vmatprep.subr.bf16.mxu0 %v798_v45  ;;  %580 = vmatprep.subr.bf16.mxu1 %v788_v46  ;;  %v174_v45 = vld [vmem:[#allocation7 + $0xf0] sm:$0xff]  ;;  %v171_v46 = vld [vmem:[#allocation7 + $0xd8] sm:$0xff]  ;;  %v785_v9 = vcombine.low %v155_v62, %v159_v63  ;;  %p963_p9 = por %p962_p8, %p961_p7 }
  0x4c   :  { %v800_v50 = vcombine.high %v170_v44, %v174_v45  ;;  %v799_v56 = vcombine.low %v170_v44, %v174_v45  ;;  %v151_v7 = vld [vmem:[#allocation7 + $0x38] sm:$0xff] }
  0x4d   :  { %p964_p10 = pnand %p963_p9, %p957_p6 }
  0x4e   :  { %620 = vmatpush1.bf16.msra.mxu0 %v797_v51  ;;  %581 = vmatpush1.bf16.msra.mxu1 %v787_v52  ;;  %v802_v51 = vcombine.high %v171_v46, %v175_v47  ;;  %v162_v52 = vld [vmem:[#allocation7 + $0x90] sm:$0xff] }
  0x4f   :  { %621 = vmatprep.subr.bf16.mxu0 %v790_v53  ;;  %582 = vmatprep.subr.bf16.mxu1 %v780_v54  ;;  %v166_v53 = vld [vmem:[#allocation7 + $0xb0] sm:$0xff]  ;;  %v163_v54 = vld [vmem:[#allocation7 + $0x98] sm:$0xff] }
  0x50   :  { %v793_v1 = vcombine.low %v163_v54, %v167_v55 }
  0x52   :  { %622 = vmatpush1.bf16.msra.mxu0 %v789_v57  ;;  %583 = vmatpush1.bf16.msra.mxu1 %v779_v58  ;;  %v801_v57 = vcombine.low %v171_v46, %v175_v47  ;;  %v792_v58 = vcombine.high %v162_v52, %v166_v53 }
  0x53   :  { %623 = vmatprep.subr.bf16.mxu0 %v782_v59  ;;  %584 = vmatprep.subr.bf16.mxu1 %v772_v0  ;;  %v794_v59 = vcombine.high %v163_v54, %v167_v55  ;;  %v791_v0 = vcombine.low %v162_v52, %v166_v53 }
  0x56   :  { %624 = vmatpush1.bf16.msra.mxu0 %v781_v60  ;;  %585 = vmatpush1.bf16.msra.mxu1 %v771_v4  ;;  %v154_v60 = vld [vmem:[#allocation7 + $0x50] sm:$0xff] }
  0x57   :  { %625 = vmatprep.subr.bf16.mxu0 %v774_v3  ;;  %652 = vmatprep.subr.bf16.mxu1 %v832_v8  ;;  %v786_v3 = vcombine.high %v155_v62, %v159_v63  ;;  %v146_v4 = vld [vmem:[#allocation7 + $0x10] sm:$0xff]  ;;  %v783_v8 = vcombine.low %v154_v60, %v158_v61 }
  0x5a   :  { %626 = vmatpush1.bf16.msra.mxu0 %v773_v2  ;;  %v784_v2 = vcombine.high %v154_v60, %v158_v61 }
  0x5b   :  { %693 = vmatprep.subr.bf16.mxu0 %v834_v12  ;;  %v775_v12 = vcombine.low %v146_v4, %v150_v5 }
  0xfd   :  { %v136_v15 = vpop.f32.mrf.mxu0 }
  0xfe   :  { %v137_v16 = vadd.f32 %v767_v14, %v136_v15  ;;  %v210_v14 = vlaneseq }
  0xff   :  { %v844_v18 = vpop.f32.mrf.mxu0 }
 0x100   :  { %v142_v22 = vmax.f32 %v137_v16, 0.0  ;;  %v211_v15 = vshrl.u32 %v210_v14, 7  ;;  %v208_v18 = vld [vmem:[#allocation8] sm:$0xff] }
 0x101   :  { %v139_v23 = vpop.f32.mrf.mxu0 }
 0x102   :  { %v1041_v24 = vpack.c.bf16 %v142_v22, %v142_v22  ;;  %v212_v16 = vsub.s32 0, %v211_v15  ;;  %v220_v17 = vsub.s32 2, %v211_v15  ;;  %v216_v19 = vsub.s32 1, %v211_v15 }
 0x103   :  { %v845_v28 = vpop.f32.mrf.mxu0  ;;  %v224_v20 = vsub.s32 3, %v211_v15  ;;  %v240_v44 = vsub.s32 7, %v211_v15 }
 0x104   :  { %603 = vmatmul.mubr.bf16.vlgmr.msra.gmra.mxu1 %v1041_v24  ;;  %644 = vmatmul.mubr.bf16.vlgmr.msra.gmra.mxu0 %v1041_v24  ;;  %v213_v21 = vrot.slane %v208_v18, %v212_v16  ;;  %v221_v22 = vrot.slane %v208_v18, %v220_v17  ;;  %v217_v23 = vrot.slane %v208_v18, %v216_v19 }
 0x105   :  { %653 = vmatpush1.bf16.msra.mxu1 %v831_v10  ;;  %694 = vmatpush1.bf16.msra.mxu0 %v833_v11  ;;  %v776_v10 = vcombine.high %v146_v4, %v150_v5  ;;  %v778_v11 = vcombine.high %v147_v6, %v151_v7 }
 0x106   :  { %654 = vmatprep.subr.bf16.mxu1 %v824_v25  ;;  %695 = vmatprep.subr.bf16.mxu0 %v826_v26  ;;  %v225_v25 = vrot.slane %v208_v18, %v224_v20 }
 0x107   :  { %684 = vmatprep.mubr.bf16.mxu1 %v994_v13  ;;  %725 = vmatprep.mubr.bf16.mxu0 %v994_v13  ;;  %v777_v13 = vcombine.low %v147_v6, %v151_v7 }
 0x109   :  { %655 = vmatpush1.bf16.msra.mxu1 %v823_v32  ;;  %696 = vmatpush1.bf16.msra.mxu0 %v825_v33 }
 0x10a   :  { %656 = vmatprep.subr.bf16.mxu1 %v816_v34  ;;  %697 = vmatprep.subr.bf16.mxu0 %v818_v35 }
 0x10d   :  { %657 = vmatpush1.bf16.msra.mxu1 %v815_v40  ;;  %698 = vmatpush1.bf16.msra.mxu0 %v817_v41  ;;  %v228_v41 = vsub.s32 4, %v211_v15 }
 0x10e   :  { %658 = vmatprep.subr.bf16.mxu1 %v808_v42  ;;  %699 = vmatprep.subr.bf16.mxu0 %v810_v43  ;;  %v236_v42 = vsub.s32 6, %v211_v15  ;;  %v232_v43 = vsub.s32 5, %v211_v15 }
 0x10f   :  { %v229_v45 = vrot.slane %v208_v18, %v228_v41 }
 0x110   :  { %v237_v46 = vrot.slane %v208_v18, %v236_v42  ;;  %v233_v47 = vrot.slane %v208_v18, %v232_v43 }
 0x111   :  { %659 = vmatpush1.bf16.msra.mxu1 %v807_v48  ;;  %700 = vmatpush1.bf16.msra.mxu0 %v809_v49  ;;  %v241_v48 = vrot.slane %v208_v18, %v240_v44 }
 0x112   :  { %660 = vmatprep.subr.bf16.mxu1 %v800_v50  ;;  %701 = vmatprep.subr.bf16.mxu0 %v802_v51 }
 0x115   :  { %661 = vmatpush1.bf16.msra.mxu1 %v799_v56  ;;  %702 = vmatpush1.bf16.msra.mxu0 %v801_v57 }
 0x116   :  { %662 = vmatprep.subr.bf16.mxu1 %v792_v58  ;;  %703 = vmatprep.subr.bf16.mxu0 %v794_v59 }
 0x119   :  { %663 = vmatpush1.bf16.msra.mxu1 %v791_v0  ;;  %704 = vmatpush1.bf16.msra.mxu0 %v793_v1 }
 0x11a   :  { %664 = vmatprep.subr.bf16.mxu1 %v784_v2  ;;  %705 = vmatprep.subr.bf16.mxu0 %v786_v3 }
 0x11d   :  { %665 = vmatpush1.bf16.msra.mxu1 %v783_v8  ;;  %706 = vmatpush1.bf16.msra.mxu0 %v785_v9 }
 0x11e   :  { %666 = vmatprep.subr.bf16.mxu1 %v776_v10  ;;  %707 = vmatprep.subr.bf16.mxu0 %v778_v11 }
 0x121   :  { %667 = vmatpush1.bf16.msra.mxu1 %v775_v12  ;;  %708 = vmatpush1.bf16.msra.mxu0 %v777_v13 }
 0x124   :  { %685 = vmatmul.mubr.bf16.vlgmr.msra.gmra.mxu1 %v1041_v24  ;;  %726 = vmatmul.mubr.bf16.vlgmr.msra.gmra.mxu0 %v1041_v24 }
 0x1c4   :  { %v604_v26 = vpop.f32.mrf.mxu1  ;;  %v645_v27 = vpop.f32.mrf.mxu0 }
 0x1c5   :  { %v605_v28 = vadd.f32 %v604_v26, %v213_v21  ;;  %v646_v29 = vadd.f32 %v645_v27, %v221_v22 }
 0x1c6   :  { %v606_v30 = vpop.f32.mrf.mxu1  ;;  %v647_v31 = vpop.f32.mrf.mxu0 }
 0x1c7   :  { %860 = vtanh.f32 %v605_v28  ;;  %v607_v32 = vadd.f32 %v606_v30, %v217_v23  ;;  %v648_v24 = vadd.f32 %v647_v31, %v225_v25 }
 0x1c8   :  { %862 = vtanh.f32 %v646_v29  ;;  %v608_v33 = vpop.f32.mrf.mxu1  ;;  %v649_v34 = vpop.f32.mrf.mxu0 }
 0x1c9   :  { %864 = vtanh.f32 %v607_v32 }
 0x1ca   :  { %866 = vtanh.f32 %v648_v24  ;;  %v609_v35 = vpop.f32.mrf.mxu1  ;;  %v650_v36 = vpop.f32.mrf.mxu0 }
 0x1d4   :  { %v861_v37 = vpop.eup %860 }
 0x1d5   :  { %v863_v38 = vpop.eup %862  ;;  %742 = vst [vmem:[#allocation10] sm:$0xff] %v861_v37 }
 0x1d6   :  { %v865_v39 = vpop.eup %864  ;;  %744 = vst [vmem:[#allocation10 + $0x10] sm:$0xff] %v863_v38 }
 0x1d7   :  { %v867_v40 = vpop.eup %866  ;;  %743 = vst [vmem:[#allocation10 + $0x8] sm:$0xff] %v865_v39 }
 0x1d8   :  { %745 = vst [vmem:[#allocation10 + $0x18] sm:$0xff] %v867_v40 }
 0x1e4   :  { %v686_v49 = vpop.f32.mrf.mxu1  ;;  %v727_v50 = vpop.f32.mrf.mxu0 }
 0x1e5   :  { %v687_v51 = vadd.f32 %v686_v49, %v229_v45  ;;  %v728_v52 = vadd.f32 %v727_v50, %v237_v46 }
 0x1e6   :  { %v688_v53 = vpop.f32.mrf.mxu1  ;;  %v729_v54 = vpop.f32.mrf.mxu0 }
 0x1e7   :  { %868 = vtanh.f32 %v687_v51  ;;  %v689_v55 = vadd.f32 %v688_v53, %v233_v47  ;;  %v730_v56 = vadd.f32 %v729_v54, %v241_v48 }
 0x1e8   :  { %870 = vtanh.f32 %v728_v52  ;;  %v690_v57 = vpop.f32.mrf.mxu1  ;;  %v731_v58 = vpop.f32.mrf.mxu0 }
 0x1e9   :  { %872 = vtanh.f32 %v689_v55 }
 0x1ea   :  { %874 = vtanh.f32 %v730_v56  ;;  %v691_v59 = vpop.f32.mrf.mxu1  ;;  %v732_v60 = vpop.f32.mrf.mxu0 }
 0x1f4   :  { %v869_v61 = vpop.eup %868 }
 0x1f5   :  { %v871_v62 = vpop.eup %870  ;;  %746 = vst [vmem:[#allocation10 + $0x20] sm:$0xff] %v869_v61 }
 0x1f6   :  { %v873_v63 = vpop.eup %872  ;;  %748 = vst [vmem:[#allocation10 + $0x30] sm:$0xff] %v871_v62 }
 0x1f7   :  { %v875_v0 = vpop.eup %874  ;;  %747 = vst [vmem:[#allocation10 + $0x28] sm:$0xff] %v873_v63 }
 0x1f8   :  { %749 = vst [vmem:[#allocation10 + $0x38] sm:$0xff] %v875_v0 }
 0x1f9   :  { %967 = shalt.err (!%p964_p10)
}
 0x1fa   :  { %759 = dma.vmem_to_hbm [thread:$0]  %s757_s15, 1024, %s1055_s5, [#allocation4]  }
 0x1fb   :  { %982 = dma.done.wait [#allocation4], 1024  }
 0x1fc   :  { %983 = vsyncadd [#allocation4], 4294966272 }
 0x1fd   :  { %763 = vsyncpa [#allocation3], 1 }
 0x1fe   :  { %764 = vsyncpa [#allocation6], 1 }
 0x1ff   :  { %765 = vsyncpa [#allocation9], 1 }
 0x200   :  { %766 = vsyncpa [#allocation4], 1 }

</bundles_post_ra>
